<compile_context>
chip_gen: v7x
topology: tpu7x:2x2x1
jax: 0.10.0
libtpu: 0.0.40
codegen_flags: <defaults>
</compile_context>

<pallas_src>
import functools

import jax
import jax.numpy as jnp
from jax import lax
from jax.experimental import pallas as pl
from jax.experimental.pallas import tpu as pltpu


def mlp_kernel(x_ref, w1_ref, b1_ref, w2_ref, b2_ref, o_ref):
    # x_ref : (tb, D_in) f32   batch tile, streamed over the grid
    # w1_ref: (H, D_in)  f32   PyTorch nn.Linear layout (no transpose needed)
    # b1_ref: (H, 1)     f32
    # w2_ref: (1, H)     f32
    # b2_ref: (1, 1)     f32   SMEM scalar
    # o_ref : (1, tb)    f32   lane-dense output row
    #
    # First Linear on the MXU with batch on the N (lane) axis:
    #   (H, D_in) x (tb, D_in) contracting D_in  ->  (H, tb), f32 accumulate.
    h = lax.dot_general(
        w1_ref[...], x_ref[...],
        dimension_numbers=(((1,), (1,)), ((), ())),
        preferred_element_type=jnp.float32)
    # Bias + ReLU on the lane-dense (H, tb) tile (f32 VPU; v5e has no bf16 VPU).
    h = jnp.maximum(h + b1_ref[...], 0.0)
    # Second Linear (H -> 1) as a (1, H) x (H, tb) MXU matmul -> (1, tb),
    # giving a lane-dense output row (no masked single-lane stores).
    y = jnp.dot(w2_ref[...], h, preferred_element_type=jnp.float32)
    o_ref[...] = y + b2_ref[0, 0]
    # Note: when B % tb != 0 the last x tile contains padded/garbage rows; they
    # only feed the corresponding (out-of-bounds) output lanes, which Pallas
    # drops on writeback, so this stays correct as long as nothing reduces
    # across the batch axis inside a tile.


def prepare_params(w1, b1, w2, b2):
    """One-time parameter prep (hoisted out of the per-call forward path).

    PyTorch nn.Linear layouts: w1 (H, D_in), b1 (H,), w2 (1, H), b2 (1,)."""
    H, _ = w1.shape
    return {
        "w1": jnp.asarray(w1, jnp.float32),               # (H, D_in), natural layout
        "b1_col": b1.reshape(H, 1).astype(jnp.float32),   # (H, 1) column for (H, tb) broadcast
        "w2_row": w2.reshape(1, H).astype(jnp.float32),   # (1, H) row for the second matmul
        "b2": b2.reshape(1, 1).astype(jnp.float32),       # (1, 1) scalar -> SMEM
    }


def _batch_tile(B, block_b):
    """Pick the batch tile: big tiles to amortize per-step overhead, but >= 4
    grid steps at large B so v7x can shard the grid across its two TCs."""
    if B <= 256:
        return B                              # toy / small batches: one block
    tb = min(block_b, pl.cdiv(B, 4))          # aim for >= 4 grid steps
    return max(128, (tb // 128) * 128)        # keep 128-lane alignment


@functools.partial(jax.jit, static_argnames=("block_b",))
def linear_lag_forward(x, params, block_b=8192):
    """x: (B, D_in) f32; params from prepare_params(). Returns (B, 1) f32."""
    B, D_in = x.shape
    H = params["w1"].shape[0]
    tb = _batch_tile(B, block_b)
    grid = (pl.cdiv(B, tb),)

    out_row = pl.pallas_call(
        mlp_kernel,
        out_shape=jax.ShapeDtypeStruct((1, B), jnp.float32),   # lane-dense output
        grid=grid,
        in_specs=[
            pl.BlockSpec((tb, D_in), lambda i: (i, 0)),   # x streams over batch
            pl.BlockSpec((H, D_in), lambda i: (0, 0)),    # weights stay VMEM-resident
            pl.BlockSpec((H, 1), lambda i: (0, 0)),
            pl.BlockSpec((1, H), lambda i: (0, 0)),
            pl.BlockSpec(memory_space=pltpu.MemorySpace.SMEM),  # b2 scalar in SMEM
        ],
        out_specs=pl.BlockSpec((1, tb), lambda i: (0, i)),
        compiler_params=pltpu.CompilerParams(
            # Batch tiles are independent -> "parallel" lets v7x use both TCs.
            dimension_semantics=("parallel",),
            # Per-step VMEM is tiny (x: 2*tb*64 B double-buffered, h: tb*128 B,
            # out: 2*tb*4 B); an explicit cap keeps tb sweeps safe on v7x's
            # 64 MiB physical VMEM as well as v5e/v6e's 128 MiB.
            vmem_limit_bytes=64 * 1024 * 1024,
        ),
    )(x, params["w1"], params["b1_col"], params["w2_row"], params["b2"])

    # (1, B) -> (B, 1): same flat layout, free reshape; keeps the module's
    # output shape contract.
    return out_row.reshape(B, 1)


if __name__ == "__main__":
    # Small shapes consistent with the module: batch=8, input_dim=16, hidden_dim=32.
    B, D_in, H = 8, 16, 32

    key = jax.random.PRNGKey(0)
    kx, kw1, kb1, kw2, kb2 = jax.random.split(key, 5)

    x = jax.random.normal(kx, (B, D_in), dtype=jnp.float32)

    # Deterministic synthetic parameters (PyTorch nn.Linear shapes / init range).
    bound1 = 1.0 / (D_in ** 0.5)
    w1 = jax.random.uniform(kw1, (H, D_in), minval=-bound1, maxval=bound1,
                            dtype=jnp.float32)
    b1 = jax.random.uniform(kb1, (H,), minval=-bound1, maxval=bound1,
                            dtype=jnp.float32)
    bound2 = 1.0 / (H ** 0.5)
    w2 = jax.random.uniform(kw2, (1, H), minval=-bound2, maxval=bound2,
                            dtype=jnp.float32)
    b2 = jax.random.uniform(kb2, (1,), minval=-bound2, maxval=bound2,
                            dtype=jnp.float32)

    params = prepare_params(w1, b1, w2, b2)   # hoisted: done once, not per call
    out = linear_lag_forward(x, params)
    out = jax.block_until_ready(out)

    # Pure-JAX f32 reference of the PyTorch forward. Kernel is now f32 end to
    # end, so the tolerance is tight.
    ref = jnp.maximum(x @ w1.T + b1, 0.0) @ w2.T + b2
    assert out.shape == (B, 1)
    assert jnp.allclose(out, ref, atol=1e-4, rtol=1e-4), (
        f"max abs err {jnp.max(jnp.abs(out - ref))}")

    print("KERNEL_OK")
</pallas_src>

<mosaic_0001>
module attributes {stable_mosaic.version = 11 : i64} {
  func.func @mlp_kernel(%arg0: i32, %arg1: memref<8x16xf32, #tpu.memory_space<vmem>>, %arg2: memref<32x16xf32, #tpu.memory_space<vmem>>, %arg3: memref<32x1xf32, #tpu.memory_space<vmem>>, %arg4: memref<1x32xf32, #tpu.memory_space<vmem>>, %arg5: memref<1x1xf32, #tpu.memory_space<smem>>, %arg6: memref<1x8xf32, #tpu.memory_space<vmem>>) attributes {dimension_semantics = [#tpu.dimension_semantics<parallel>], iteration_bounds = array<i64: 1>, scalar_prefetch = 0 : i64, scratch_operands = 0 : i64, tpu.core_type = #tpu.core_type<tc>, window_params = [{transform_indices = @transform_0, window_bounds = array<i64: 8, 16>}, {pipeline_mode = #tpu.pipeline_mode<synchronous>, transform_indices = @transform_1, window_bounds = array<i64: 32, 16>}, {pipeline_mode = #tpu.pipeline_mode<synchronous>, transform_indices = @transform_2, window_bounds = array<i64: 32, 1>}, {pipeline_mode = #tpu.pipeline_mode<synchronous>, transform_indices = @transform_3, window_bounds = array<i64: 1, 32>}, {transform_indices = @transform_4, window_bounds = array<i64: 1, 1>}, {transform_indices = @transform_5, window_bounds = array<i64: 1, 8>}]} {
    %c0 = arith.constant 0 : index
    %c0_0 = arith.constant 0 : index
    %0 = vector.load %arg2[%c0, %c0_0] : memref<32x16xf32, #tpu.memory_space<vmem>>, vector<32x16xf32>
    %c0_1 = arith.constant 0 : index
    %c0_2 = arith.constant 0 : index
    %1 = vector.load %arg1[%c0_1, %c0_2] : memref<8x16xf32, #tpu.memory_space<vmem>>, vector<8x16xf32>
    %cst = arith.constant dense<0.000000e+00> : vector<32x8xf32>
    %2 = tpu.matmul %0, %1, %cst {dimension_numbers = #tpu.dot_dimension_numbers<[1], [1], [0], [0], [0, 0, 1, 0], [], []>} : vector<32x16xf32>, vector<8x16xf32>, vector<32x8xf32> -> vector<32x8xf32>
    %c0_3 = arith.constant 0 : index
    %c0_4 = arith.constant 0 : index
    %3 = vector.load %arg3[%c0_3, %c0_4] : memref<32x1xf32, #tpu.memory_space<vmem>>, vector<32x1xf32>
    %4 = vector.broadcast %3 : vector<32x1xf32> to vector<32x8xf32>
    %5 = arith.addf %2, %4 : vector<32x8xf32>
    %cst_5 = arith.constant 0.000000e+00 : f32
    %6 = vector.broadcast %cst_5 : f32 to vector<32x8xf32>
    %7 = arith.maximumf %5, %6 : vector<32x8xf32>
    %c0_6 = arith.constant 0 : index
    %c0_7 = arith.constant 0 : index
    %8 = vector.load %arg4[%c0_6, %c0_7] : memref<1x32xf32, #tpu.memory_space<vmem>>, vector<1x32xf32>
    %cst_8 = arith.constant dense<0.000000e+00> : vector<1x8xf32>
    %9 = tpu.matmul %8, %7, %cst_8 {dimension_numbers = #tpu.dot_dimension_numbers<[1], [0], [0], [1], [0, 0, 1, 1], [], []>} : vector<1x32xf32>, vector<32x8xf32>, vector<1x8xf32> -> vector<1x8xf32>
    %c0_9 = arith.constant 0 : index
    %c0_10 = arith.constant 0 : index
    %10 = memref.load %arg5[%c0_9, %c0_10] : memref<1x1xf32, #tpu.memory_space<smem>>
    %11 = vector.broadcast %10 : f32 to vector<1x8xf32>
    %12 = arith.addf %9, %11 : vector<1x8xf32>
    %c0_11 = arith.constant 0 : index
    %c0_12 = arith.constant 0 : index
    %13 = vector.load %arg6[%c0_11, %c0_12] : memref<1x8xf32, #tpu.memory_space<vmem>>, vector<1x8xf32>
    tpu.vector_store %arg6[%c0_11, %c0_12], %12 {strides = array<i32>} : memref<1x8xf32, #tpu.memory_space<vmem>>, vector<1x8xf32>,
    return
  }
  func.func @transform_0(%arg0: i32) -> (i32, i32) {
    %c0_i32 = arith.constant 0 : i32
    %c0_i32_0 = arith.constant 0 : i32
    return %arg0, %c0_i32 : i32, i32
  }
  func.func @transform_1(%arg0: i32) -> (i32, i32) {
    %c0_i32 = arith.constant 0 : i32
    %c0_i32_0 = arith.constant 0 : i32
    %c0_i32_1 = arith.constant 0 : i32
    return %c0_i32, %c0_i32_0 : i32, i32
  }
  func.func @transform_2(%arg0: i32) -> (i32, i32) {
    %c0_i32 = arith.constant 0 : i32
    %c0_i32_0 = arith.constant 0 : i32
    %c0_i32_1 = arith.constant 0 : i32
    return %c0_i32, %c0_i32_0 : i32, i32
  }
  func.func @transform_3(%arg0: i32) -> (i32, i32) {
    %c0_i32 = arith.constant 0 : i32
    %c0_i32_0 = arith.constant 0 : i32
    %c0_i32_1 = arith.constant 0 : i32
    return %c0_i32, %c0_i32_0 : i32, i32
  }
  func.func @transform_4(%arg0: i32) -> (i32, i32) {
    %c0_i32 = arith.constant 0 : i32
    %c0_i32_0 = arith.constant 0 : i32
    %c0_i32_1 = arith.constant 0 : i32
    return %c0_i32, %c0_i32_0 : i32, i32
  }
  func.func @transform_5(%arg0: i32) -> (i32, i32) {
    %c0_i32 = arith.constant 0 : i32
    %c0_i32_0 = arith.constant 0 : i32
    return %c0_i32, %arg0 : i32, i32
  }
}

</mosaic_0001>

<bundles_post_ra>
// kernel: linear_lag_forward.1
= control target key start
LH: loop header
LB: loop body
LE: loop exit
PB: predicated region body
PF: predicated region fallthrough
CT: control target
= control target key end

     0   :  { %11 = vsyncpa [#allocation4], 0  ;;  %s591_s0 = inlined_call_operand.hbm [shape: f32[8,16], index: 0, kind: input, shape index: {}]   ;;  %s592_s1 = inlined_call_operand.hbm [shape: f32[32,16], index: 1, kind: input, shape index: {}]   ;;  %s593_s2 = inlined_call_operand.hbm [shape: f32[32,1], index: 2, kind: input, shape index: {}]   ;;  %s594_s3 = inlined_call_operand.hbm [shape: f32[1,32], index: 3, kind: input, shape index: {}]   ;;  %s595_s4 = inlined_call_operand.<no memory space> [shape: f32[1,1], index: 4, kind: input, shape index: {}]   ;;  %s596_s5 = inlined_call_operand.hbm [shape: f32[1,8], index: 5, kind: output, shape index: {}]  }
   0x1   :  { %12 = vsyncpa [#allocation7], 0 }
   0x2   :  { %13 = vsyncpa [#allocation10], 0 }
   0x3   :  { %14 = vsyncpa [#allocation5], 0  ;;  %s475_s18 = smov [#allocation6]   ;;  %s357_s22 = scalar_lea.hbm %s592_s1, 512 }
   0x4   :  { %s30_s19 = sshll.u32 %s475_s18, 4  ;;  %p358_p0 = scmp.ne.s32.totalorder %s592_s1, %s357_s22  ;;  %s31_s19 = int_to_ptr.vmem [resolvable:$true] %s30_s19 }
   0x5   :  { %p361_p1 = scmp.lt.u32.totalorder %s357_s22, %s592_s1 }
   0x7   :  { %p363_p2 = pnand %p361_p1, %p358_p0 }
   0x9   :  { %366 = shalt.err (!%p363_p2)
}
   0xa   :  { %s367_s27 = scalar_lea.vmem %s31_s19, 512  ;;  %p372_p4 = scmp.lt.s32.totalorder %s31_s19, %s31_s19 }
   0xb   :  { %p368_p3 = scmp.ne.s32.totalorder %s31_s19, %s367_s27  ;;  %p373_p5 = scmp.lt.s32.totalorder %s367_s27, %s367_s27 }
   0xd   :  { %p374_p6 = por %p373_p5, %p372_p4 }
   0xf   :  { %p375_p7 = pnand %p374_p6, %p368_p3 }
  0x11   :  { %378 = shalt.err (!%p375_p7)
}
  0x12   :  { %s476_s28 = smov 128   ;;  %s477_s29 = smov 8  }
  0x13   :  { %36 = dma.hbm_to_vmem [thread:$0]  %s592_s1, 512, %s31_s19, [#allocation7], %s476_s28, %s476_s28, %s477_s29  }
  0x14   :  { %s478_s7 = smov [#allocation3]   ;;  %s479_s9 = smov [#allocation8]  }
  0x15   :  { %s21_s8 = sshll.u32 %s478_s7, 4  ;;  %s42_s10 = sshll.u32 %s479_s9, 4  ;;  %s22_s8 = int_to_ptr.vmem [resolvable:$true] %s21_s8  ;;  %s43_s10 = int_to_ptr.vmem [resolvable:$true] %s42_s10 }
  0x16   :  { %s379_s13 = scalar_lea.hbm %s591_s0, 128 }
  0x17   :  { %p380_p8 = scmp.ne.s32.totalorder %s591_s0, %s379_s13  ;;  %p383_p9 = scmp.lt.u32.totalorder %s379_s13, %s591_s0 }
  0x19   :  { %p385_p10 = pnand %p383_p9, %p380_p8 }
  0x1b   :  { %388 = shalt.err (!%p385_p10)
}
  0x1c   :  { %s389_s1 = scalar_lea.vmem %s22_s8, 128  ;;  %p394_p12 = scmp.lt.s32.totalorder %s22_s8, %s22_s8 }
  0x1d   :  { %p390_p11 = scmp.ne.s32.totalorder %s22_s8, %s389_s1  ;;  %p395_p13 = scmp.lt.s32.totalorder %s389_s1, %s389_s1 }
  0x1f   :  { %p396_p0 = por %p395_p13, %p394_p12 }
  0x21   :  { %p397_p1 = pnand %p396_p0, %p390_p11 }
  0x23   :  { %400 = shalt.err (!%p397_p1)
}
  0x24   :  { %24 = dma.hbm_to_vmem [thread:$0]  %s591_s0, 128, %s22_s8, [#allocation4]  }
  0x25   :  { %s401_s22 = scalar_lea.hbm %s593_s2, 512 }
  0x26   :  { %p402_p2 = scmp.ne.s32.totalorder %s593_s2, %s401_s22  ;;  %p405_p3 = scmp.lt.u32.totalorder %s401_s22, %s593_s2 }
  0x28   :  { %p407_p4 = pnand %p405_p3, %p402_p2 }
  0x2a   :  { %410 = shalt.err (!%p407_p4)
}
  0x2b   :  { %s411_s27 = scalar_lea.vmem %s43_s10, 512  ;;  %p416_p6 = scmp.lt.s32.totalorder %s43_s10, %s43_s10 }
  0x2c   :  { %p412_p5 = scmp.ne.s32.totalorder %s43_s10, %s411_s27  ;;  %p417_p7 = scmp.lt.s32.totalorder %s411_s27, %s411_s27 }
  0x2e   :  { %p418_p8 = por %p417_p7, %p416_p6 }
  0x30   :  { %p419_p9 = pnand %p418_p8, %p412_p5 }
  0x32   :  { %422 = shalt.err (!%p419_p9)
}
  0x33   :  { %48 = dma.hbm_to_vmem [thread:$0]  %s593_s2, 512, %s43_s10, [#allocation7], %s476_s28, %s476_s28, %s477_s29  }
  0x34   :  { %s480_s6 = smov [#allocation9]   ;;  %s423_s11 = scalar_lea.hbm %s594_s3, 16 }
  0x35   :  { %s55_s7 = sshll.u32 %s480_s6, 4  ;;  %p424_p10 = scmp.ne.s32.totalorder %s594_s3, %s423_s11  ;;  %s56_s7 = int_to_ptr.vmem [resolvable:$true] %s55_s7 }
  0x36   :  { %p427_p11 = scmp.lt.u32.totalorder %s423_s11, %s594_s3 }
  0x38   :  { %p429_p12 = pnand %p427_p11, %p424_p10 }
  0x3a   :  { %432 = shalt.err (!%p429_p12)
}
  0x3b   :  { %s433_s16 = scalar_lea.vmem %s56_s7, 16  ;;  %s437_s2 = scalar_lea.vmem %s56_s7, 32 }
  0x3c   :  { %p434_p13 = scmp.ne.s32.totalorder %s56_s7, %s433_s16  ;;  %p438_p0 = scmp.lt.s32.totalorder %s56_s7, %s56_s7 }
  0x3d   :  { %p439_p1 = scmp.lt.s32.totalorder %s437_s2, %s433_s16 }
  0x3f   :  { %p440_p2 = por %p439_p1, %p438_p0 }
  0x41   :  { %p441_p3 = pnand %p440_p2, %p434_p13 }
  0x43   :  { %444 = shalt.err (!%p441_p3)
}
  0x44   :  { %58 = dma.hbm_to_vmem [thread:$0]  %s594_s3, 16, %s56_s7, [#allocation10]  }
  0x45   :  { %467 = dma.done.wait [#allocation4], 128  }
  0x46   :  { %468 = vsyncadd [#allocation4], 4294967168 }
  0x47   :  { %469 = dma.done.wait [#allocation7], 1024  }
  0x48   :  { %470 = vsyncadd [#allocation7], 4294966272 }
  0x49   :  { %471 = dma.done.wait [#allocation10], 16  }
  0x4a   :  { %472 = vsyncadd [#allocation10], 4294967280  ;;  %v481_v0 = vmov 0   ;;  %vm102_vm0 = vcmask 130048   ;;  %v77_v1 = vld [vmem:[#allocation3] sm:$0xff]  ;;  %v73_v2 = vld [vmem:[#allocation6] sm:$0xff]  ;;  %v209_v31 = vstv %s595_s4 }
  0x4b   :  { %355 = vset.pattern.permute.xlu0 %v481_v0  ;;  %356 = vset.pattern.permute.xlu1 %v481_v0  ;;  %v78_v3 = vld [vmem:[#allocation8] sm:$0xff]  ;;  %v74_v4 = vld [vmem:[#allocation6 + $0x8] sm:$0xff]  ;;  %v80_v5 = vld [vmem:[#allocation8 + $0x10] sm:$0xff]  ;;  %v482_v10 = vmov 0.0|0.0   ;;  %vm483_vm1 = vmmov 0   ;;  %v484_v11 = vmov 0.0  }
  0x4c   :  { %319 = vmatprep.subr.msk.mxu0 %vm102_vm0, %v77_v1  ;;  %321 = vmatprep.mubr.msk.f32.mxu0 %vm102_vm0, %v73_v2  ;;  %v75_v6 = vld [vmem:[#allocation6 + $0x10] sm:$0xff]  ;;  %v79_v7 = vld [vmem:[#allocation8 + $0x8] sm:$0xff]  ;;  %v81_v8 = vld [vmem:[#allocation8 + $0x18] sm:$0xff]  ;;  %vm210_vm2 = vcmask 261120   ;;  %s485_s17 = smov [#allocation11]   ;;  %vm284_vm3 = vcmask 57344  }
  0x4d   :  { %320 = vmatpush3.xpose.msk.msra.mxu0 %vm102_vm0, %v77_v1  ;;  %84 = vperm.xlu0 %355, %v78_v3   ;;  %v76_v9 = vld [vmem:[#allocation6 + $0x18] sm:$0xff]  ;;  %v207_v30 = vld [vmem:[#allocation9] sm:$0x1]  ;;  %s292_s1 = sshll.u32 %s485_s17, 4  ;;  %s293_s1 = int_to_ptr.vmem [resolvable:$true] %s292_s1 }
  0x4e   :  { %94 = vperm.xlu1 %356, %v80_v5   ;;  %338 = vmatprep.subr.bf16.mxu1 %v482_v10  ;;  %s445_s18 = scalar_lea.vmem %s293_s1, 16  ;;  %s449_s19 = scalar_lea.vmem %s293_s1, 32 }
  0x4f   :  { %335 = vmatprep.mubr.msk.f32.mxu1 %vm483_vm1, %v484_v11  ;;  %p446_p4 = scmp.ne.s32.totalorder %s293_s1, %s445_s18  ;;  %p450_p5 = scmp.lt.s32.totalorder %s293_s1, %s293_s1 }
  0x50   :  { %322 = vmatmul.mubr.msk.f32.vlgmr.msra.gmra.mrb[0].mxu0 %vm102_vm0, %v74_v4  ;;  %p451_p6 = scmp.lt.s32.totalorder %s449_s19, %s445_s18 }
  0x51   :  { %324 = vmatprep.mubr.msk.f32.mxu0 %vm102_vm0, %v75_v6  ;;  %89 = vperm.xlu0 %355, %v79_v7  }
  0x52   :  { %99 = vperm.xlu1 %356, %v81_v8   ;;  %p452_p7 = por %p451_p6, %p450_p5 }
  0x54   :  { %325 = vmatmul.mubr.msk.f32.gmra.mrb[2].mxu0 %vm102_vm0, %v76_v9  ;;  %p453_p8 = pnand %p452_p7, %p446_p4 }
  0xcc   :  { %v85_v12 = vpop.permute.xlu0 %84 }
  0xcd   :  { %v95_v13 = vpop.permute.xlu1 %94 }
  0xd0   :  { %v90_v14 = vpop.permute.xlu0 %89 }
  0xd1   :  { %v100_v20 = vpop.permute.xlu1 %99 }
 0x123   :  { %v323_v15 = vpop.f32.mrb[0].mxu0 }
 0x124   :  { %v190_v16 = vadd.f32 %v323_v15, %v90_v14  ;;  %v184_v17 = vpop.f32.mrb[1].mxu0 }
 0x125   :  { %v185_v18 = vadd.f32 %v184_v17, %v85_v12 }
 0x126   :  { %v204_v19 = vmax.f32 %v190_v16, 0.0 }
 0x127   :  { %v203_v21 = vmax.f32 %v185_v18, 0.0  ;;  %v326_v22 = vpop.f32.mrb[2].mxu0 }
 0x128   :  { %v200_v23 = vadd.f32 %v326_v22, %v100_v20  ;;  %v194_v24 = vpop.f32.mrb[3].mxu0 }
 0x129   :  { %v195_v25 = vadd.f32 %v194_v24, %v95_v13  ;;  %v339_v26 = vpack.c.bf16 %v204_v19, %v203_v21 }
 0x12a   :  { %v206_v27 = vmax.f32 %v200_v23, 0.0 }
 0x12b   :  { %v205_v28 = vmax.f32 %v195_v25, 0.0  ;;  %340 = vmatpush3.bf16.msra.mxu1 %v339_v26 }
 0x12c   :  { %341 = vmatprep.subr.bf16.mxu1 %v482_v10 }
 0x12d   :  { %v342_v29 = vpack.c.bf16 %v206_v27, %v205_v28 }
 0x12f   :  { %343 = vmatpush3.bf16.msra.mxu1 %v342_v29 }
 0x132   :  { %336 = vmatmul.mubr.msk.f32.vlgmr.msra.gmra.mrb[0].mxu1 %vm210_vm2, %v207_v30 }
 0x205   :  { %v280_v32 = vpop.f32.mrb[0].mxu1 }
 0x206   :  { %v281_v33 = vadd.f32 %v280_v32, %v209_v31  ;;  %v337_v34 = vpop.f32.mrb[1].mxu1 }
 0x208   :  { %285 = vst.msk [vmem:[#allocation11] sm:$0x1] %vm284_vm3, %v281_v33 }
 0x209   :  { %456 = shalt.err (!%p453_p8)
}
 0x20a   :  { %s457_s4 = scalar_lea.hbm %s596_s5, 16 }
 0x20b   :  { %p458_p9 = scmp.ne.s32.totalorder %s596_s5, %s457_s4  ;;  %p461_p10 = scmp.lt.u32.totalorder %s457_s4, %s596_s5 }
 0x20d   :  { %p463_p11 = pnand %p461_p10, %p458_p9 }
 0x20f   :  { %466 = shalt.err (!%p463_p11)
}
 0x210   :  { %295 = dma.vmem_to_hbm [thread:$0]  %s293_s1, 16, %s596_s5, [#allocation5]  }
 0x211   :  { %473 = dma.done.wait [#allocation5], 16  }
 0x212   :  { %474 = vsyncadd [#allocation5], 4294967280 }
 0x213   :  { %299 = vsyncpa [#allocation4], 1 }
 0x214   :  { %300 = vsyncpa [#allocation7], 1 }
 0x215   :  { %301 = vsyncpa [#allocation10], 1 }
 0x216   :  { %302 = vsyncpa [#allocation5], 1 }

</bundles_post_ra>
